<compile_context>
chip_gen: v7x
topology: tpu7x:2x2x1
jax: 0.10.0
libtpu: 0.0.40
codegen_flags: <defaults>
</compile_context>

<pallas_src>
import jax
import jax.numpy as jnp
from jax import lax
from jax.experimental import pallas as pl
from jax.experimental.pallas import tpu as pltpu


def drn_kernel(t_ref, b_ref, g_ref, gt_ref, p_ref, o_ref):
    """One batch block.

    t_ref : [Nl, Ql, nqp]   precomputed T (transposed for matmul), VMEM-resident
    b_ref : [1, nqp]        precomputed exponent_B (padding columns = -1e30)
    g_ref : [nqp, gp]       one-hot group matrix (column j marks group j's lanes)
    gt_ref: [gp, nqp]       its transpose
    p_ref : [Nl, BB, Ql]    batch block of input distributions
    o_ref : [BB, nqp]       normalized output (flattened, padded lanes are 0)
    """
    n_lower = p_ref.shape[0]
    bb = p_ref.shape[1]
    nqp = t_ref.shape[2]

    # ---- MXU contraction + log-sum over lower nodes k (fori_loop bounds live ranges) ----
    #   Pw_k[b, j*Qu+l] = sum_m P[k,b,m] * Tt[k,m,j*Qu+l]
    def step(k, acc):
        pw = jnp.dot(p_ref[k], t_ref[k], preferred_element_type=jnp.float32)
        return acc + jnp.log(jnp.clip(pw, 1e-15, 1e15))

    logsum = lax.fori_loop(0, n_lower, step, jnp.zeros((bb, nqp), jnp.float32))

    z = logsum + b_ref[...]                       # add exponent_B (broadcast over batch)

    # ---- grouped softmax, fully vectorized ----
    # Row max is mathematically equivalent to the per-group max of the reference
    # (softmax is shift-invariant); padded lanes sit at -1e30 and exp to 0.
    m = jnp.max(z, axis=-1, keepdims=True)
    e = jnp.exp(z - m)                                            # [BB, nqp]

    s = jnp.dot(e, g_ref[...], preferred_element_type=jnp.float32)   # per-group sums [BB, gp]
    s = jnp.maximum(s, 1e-30)                     # guards padded groups / extreme underflow
    inv = pl.reciprocal(s, approx=True)           # EUP seed
    inv = inv * (2.0 - s * inv)                   # one Newton step -> ~f32 exact

    # Broadcast each group's 1/sum back onto its lanes (padded lanes get 0).
    o_ref[...] = e * jnp.dot(inv, gt_ref[...], preferred_element_type=jnp.float32)


def _round_up(x, m):
    return (x + m - 1) // m * m


def _choose_batch_block(batch, cap=128):
    """Batch tile: <= cap, multiple of 8, >= 2 grid steps when the batch can split (v7x)."""
    bb = min(cap, _round_up(batch, 8))
    if 8 < batch <= 2 * cap:
        bb = min(bb, _round_up((batch + 1) // 2, 8))
    return max(bb, 8)


def drn_forward(P, weight, bias_abs, bias_q, lambda_abs, lambda_q,
                q_lower, q_upper, *, use_bf16_mxu=False):
    P = jnp.asarray(P, jnp.float32)
    batch, n_lower, ql = P.shape
    assert ql == q_lower
    n_upper = weight.shape[0]
    nq = n_upper * q_upper
    nqp = _round_up(nq, 128)           # lane-dense padded slab width
    gp = _round_up(n_upper, 128)       # lane-dense group axis

    # --------- batch-independent precompute (once per call, outside the grid) ---------
    s1 = jnp.arange(q_upper, dtype=jnp.float32)[:, None] / q_upper        # [Qu, 1]
    s0m = jnp.arange(q_lower, dtype=jnp.float32)[None, :] / q_lower       # [1, Ql]
    logD = -(s0m - s1) ** 2                                               # [Qu, Ql]
    # T[j,k,l,m] = D[l,m] ** W[j,k] = exp(W[j,k] * logD[l,m])
    T = jnp.exp(weight.astype(jnp.float32)[:, :, None, None] * logD[None, None])
    # Transpose to [Nl, Ql, nq] so the kernel does P[k] @ Tt[k] on the MXU; zero-pad lanes.
    Tt = jnp.transpose(T, (1, 3, 0, 2)).reshape(n_lower, q_lower, nq)
    Tt = jnp.pad(Tt, ((0, 0), (0, 0), (0, nqp - nq)))

    s0 = jnp.arange(q_upper, dtype=jnp.float32)[None, :] / q_upper        # [1, Qu]
    B = (-bias_q.astype(jnp.float32) * (s0 - lambda_q) ** 2
         - bias_abs.astype(jnp.float32) * jnp.abs(s0 - lambda_abs))       # [Nu, Qu]
    # Padded lanes get -1e30 so they never win the row max and exp() to exactly 0.
    Bflat = jnp.pad(B.reshape(1, nq), ((0, 0), (0, nqp - nq)), constant_values=-1e30)

    # One-hot group matrices for the MXU-based grouped softmax normalization.
    col = jnp.arange(nqp)
    G = ((col[:, None] // q_upper == jnp.arange(gp)[None, :])
         & (col[:, None] < nq)).astype(jnp.float32)                       # [nqp, gp]
    Gt = G.T                                                              # [gp, nqp]

    # P with batch on sublanes of each per-k matmul: [Nl, batch, Ql]; pad the batch.
    Pkb = jnp.transpose(P, (1, 0, 2))
    bb = _choose_batch_block(batch)
    batch_pad = _round_up(batch, bb)
    if batch_pad != batch:
        Pkb = jnp.pad(Pkb, ((0, 0), (0, batch_pad - batch), (0, 0)))
    grid = (batch_pad // bb,)

    if use_bf16_mxu:
        # v6e/v7x: native bf16 MXU path + halved resident Tt; revalidate tolerance.
        Tt = Tt.astype(jnp.bfloat16)
        Pkb = Pkb.astype(jnp.bfloat16)
    itemsize = 2 if use_bf16_mxu else 4

    # Explicit VMEM budget: resident Tt/B/G/Gt (single buffer) + double-buffered P/out blocks.
    block_bytes = (n_lower * q_lower * nqp * itemsize
                   + nqp * 4 + 2 * nqp * gp * 4
                   + 2 * n_lower * bb * q_lower * itemsize
                   + 2 * bb * nqp * 4)
    vmem_limit = int(min(96 * 2**20, max(32 * 2**20, block_bytes + (8 << 20))))

    resident = pl.BlockSpec(memory_space=pltpu.MemorySpace.VMEM)   # whole array, 1 buffer

    out_flat = pl.pallas_call(
        drn_kernel,
        out_shape=jax.ShapeDtypeStruct((batch_pad, nqp), jnp.float32),
        grid=grid,
        in_specs=[
            resident,                                                     # Tt
            resident,                                                     # exponent_B
            resident,                                                     # G
            resident,                                                     # Gt
            pl.BlockSpec((n_lower, bb, q_lower), lambda b: (0, b, 0)),    # P batch block
        ],
        out_specs=pl.BlockSpec((bb, nqp), lambda b: (b, 0)),
        compiler_params=pltpu.CompilerParams(
            dimension_semantics=("parallel",),
            vmem_limit_bytes=vmem_limit),
    )(Tt, Bflat, G, Gt, Pkb)

    return out_flat[:batch, :nq].reshape(batch, n_upper, q_upper)


def drn_reference(P, weight, ba, bq, la, lq, q_lower, q_upper):
    """Pure-JAX reference mirroring the torch forward (exact f32, no MXU)."""
    s1 = jnp.arange(q_upper, dtype=jnp.float32)[:, None] / q_upper
    s0m = jnp.arange(q_lower, dtype=jnp.float32)[None, :] / q_lower
    Dbase = jnp.exp(-(s0m - s1) ** 2)                                     # [Qu, Ql]
    T = Dbase[None, None] ** weight[:, :, None, None]                     # [Nu, Nl, Qu, Ql]
    Pw = jnp.sum(T[None] * P[:, None, :, None, :], axis=-1)               # [B, Nu, Nl, Qu]
    Pw = jnp.clip(Pw, 1e-15, 1e15)
    logsum = jnp.sum(jnp.log(Pw), axis=2)                                 # [B, Nu, Qu]
    s0 = jnp.arange(q_upper, dtype=jnp.float32)[None, :] / q_upper
    B = -bq * (s0 - lq) ** 2 - ba * jnp.abs(s0 - la)                      # [Nu, Qu]
    z = logsum + B[None]
    m = jnp.max(z, axis=2, keepdims=True)
    e = jnp.exp(z - m)
    return e / jnp.sum(e, axis=2, keepdims=True)


if __name__ == "__main__":
    batch, n_lower, n_upper, q_lower, q_upper = 2, 4, 3, 16, 8

    key = jax.random.PRNGKey(0)
    k1, k2, k3, k4, k5, k6 = jax.random.split(key, 6)

    # Deterministic parameter init (matching __init__ shapes; xavier_normal-like
    # scale for weight, normal for biases, uniform(0,1) for lambdas).
    std = (2.0 / (n_upper + n_lower)) ** 0.5
    weight = std * jax.random.normal(k1, (n_upper, n_lower), jnp.float32)
    bias_abs = jax.random.normal(k2, (n_upper, 1), jnp.float32)
    bias_q = jax.random.normal(k3, (n_upper, 1), jnp.float32)
    lambda_abs = jax.random.uniform(k4, (n_upper, 1), dtype=jnp.float32)
    lambda_q = jax.random.uniform(k5, (n_upper, 1), dtype=jnp.float32)

    # Input distributions: [batch, n_lower, q_lower], normalized along q_lower.
    P = jax.nn.softmax(
        jax.random.normal(k6, (batch, n_lower, q_lower), jnp.float32), axis=-1)

    out = drn_forward(P, weight, bias_abs, bias_q, lambda_abs, lambda_q,
                      q_lower, q_upper)
    out = jax.block_until_ready(out)

    ref = drn_reference(P, weight, bias_abs, bias_q, lambda_abs, lambda_q,
                        q_lower, q_upper)
    assert out.shape == (batch, n_upper, q_upper)
    # Each output row is a probability distribution over q_upper.
    assert jnp.allclose(jnp.sum(out, axis=-1), 1.0, atol=1e-4)
    # Tolerance absorbs MXU f32-pass rounding vs. the pure-VPU reference.
    assert jnp.allclose(out, ref, atol=2e-3, rtol=2e-3), "kernel/reference mismatch"

    print("KERNEL_OK")
</pallas_src>

<mosaic_0001>
module attributes {stable_mosaic.version = 11 : i64} {
  func.func @drn_kernel(%arg0: i32, %arg1: memref<4x16x128xf32, #tpu.memory_space<vmem>>, %arg2: memref<1x128xf32, #tpu.memory_space<vmem>>, %arg3: memref<128x128xf32, #tpu.memory_space<vmem>>, %arg4: memref<128x128xf32, #tpu.memory_space<vmem>>, %arg5: memref<4x8x16xf32, #tpu.memory_space<vmem>>, %arg6: memref<8x128xf32, #tpu.memory_space<vmem>>) attributes {dimension_semantics = [#tpu.dimension_semantics<parallel>], iteration_bounds = array<i64: 1>, scalar_prefetch = 0 : i64, scratch_operands = 0 : i64, tpu.core_type = #tpu.core_type<tc>, window_params = [{pipeline_mode = #tpu.pipeline_mode<synchronous>, transform_indices = @transform_0, window_bounds = array<i64: 4, 16, 128>}, {pipeline_mode = #tpu.pipeline_mode<synchronous>, transform_indices = @transform_1, window_bounds = array<i64: 1, 128>}, {pipeline_mode = #tpu.pipeline_mode<synchronous>, transform_indices = @transform_2, window_bounds = array<i64: 128, 128>}, {pipeline_mode = #tpu.pipeline_mode<synchronous>, transform_indices = @transform_3, window_bounds = array<i64: 128, 128>}, {transform_indices = @transform_4, window_bounds = array<i64: 4, 8, 16>}, {transform_indices = @transform_5, window_bounds = array<i64: 8, 128>}]} {
    %cst = arith.constant 0.000000e+00 : f32
    %0 = vector.broadcast %cst : f32 to vector<8x128xf32>
    %c0_i32 = arith.constant 0 : i32
    %c4_i32 = arith.constant 4 : i32
    %1 = arith.addi %c0_i32, %c4_i32 : i32
    %c1_i32 = arith.constant 1 : i32
    %2 = scf.for %arg7 = %c0_i32 to %1 step %c1_i32 iter_args(%arg8 = %0) -> (vector<8x128xf32>)  : i32 {
      %24 = arith.index_cast %arg7 : i32 to index
      %c0_13 = arith.constant 0 : index
      %c0_14 = arith.constant 0 : index
      %25 = vector.load %arg5[%24, %c0_13, %c0_14] : memref<4x8x16xf32, #tpu.memory_space<vmem>>, vector<1x8x16xf32>
      %26 = vector.shape_cast %25 : vector<1x8x16xf32> to vector<8x16xf32>
      %27 = arith.index_cast %arg7 : i32 to index
      %c0_15 = arith.constant 0 : index
      %c0_16 = arith.constant 0 : index
      %28 = vector.load %arg1[%27, %c0_15, %c0_16] : memref<4x16x128xf32, #tpu.memory_space<vmem>>, vector<1x16x128xf32>
      %29 = vector.shape_cast %28 : vector<1x16x128xf32> to vector<16x128xf32>
      %cst_17 = arith.constant dense<0.000000e+00> : vector<8x128xf32>
      %30 = tpu.matmul %26, %29, %cst_17 {dimension_numbers = #tpu.dot_dimension_numbers<[1], [0], [0], [1], [0, 0, 1, 1], [], []>} : vector<8x16xf32>, vector<16x128xf32>, vector<8x128xf32> -> vector<8x128xf32>
      %cst_18 = arith.constant 1.000000e-15 : f32
      %cst_19 = arith.constant 9.99999986E+14 : f32
      %31 = vector.broadcast %cst_18 : f32 to vector<8x128xf32>
      %32 = arith.maximumf %31, %30 : vector<8x128xf32>
      %33 = vector.broadcast %cst_19 : f32 to vector<8x128xf32>
      %34 = arith.minimumf %33, %32 : vector<8x128xf32>
      %35 = math.log %34 : vector<8x128xf32>
      %36 = arith.addf %arg8, %35 : vector<8x128xf32>
      scf.yield %36 : vector<8x128xf32>
    }
    %c4_i32_0 = arith.constant 4 : i32
    %c0 = arith.constant 0 : index
    %c0_1 = arith.constant 0 : index
    %3 = vector.load %arg2[%c0, %c0_1] : memref<1x128xf32, #tpu.memory_space<vmem>>, vector<1x128xf32>
    %4 = vector.broadcast %3 : vector<1x128xf32> to vector<8x128xf32>
    %5 = arith.addf %2, %4 : vector<8x128xf32>
    %cst_2 = arith.constant dense<0xFF800000> : vector<8xf32>
    %6 = vector.multi_reduction <maximumf>, %5, %cst_2 [1] : vector<8x128xf32> to vector<8xf32>
    %7 = vector.shape_cast %6 : vector<8xf32> to vector<8x1xf32>
    %8 = vector.broadcast %7 : vector<8x1xf32> to vector<8x128xf32>
    %9 = arith.subf %5, %8 : vector<8x128xf32>
    %10 = math.exp %9 : vector<8x128xf32>
    %c0_3 = arith.constant 0 : index
    %c0_4 = arith.constant 0 : index
    %11 = vector.load %arg3[%c0_3, %c0_4] : memref<128x128xf32, #tpu.memory_space<vmem>>, vector<128x128xf32>
    %cst_5 = arith.constant dense<0.000000e+00> : vector<8x128xf32>
    %12 = tpu.matmul %10, %11, %cst_5 {dimension_numbers = #tpu.dot_dimension_numbers<[1], [0], [0], [1], [0, 0, 1, 1], [], []>} : vector<8x128xf32>, vector<128x128xf32>, vector<8x128xf32> -> vector<8x128xf32>
    %cst_6 = arith.constant 1.000000e-30 : f32
    %13 = vector.broadcast %cst_6 : f32 to vector<8x128xf32>
    %14 = arith.maximumf %12, %13 : vector<8x128xf32>
    %15 = tpu.reciprocal %14 {approx = true} : vector<8x128xf32> -> vector<8x128xf32>
    %16 = arith.mulf %14, %15 : vector<8x128xf32>
    %cst_7 = arith.constant 2.000000e+00 : f32
    %17 = vector.broadcast %cst_7 : f32 to vector<8x128xf32>
    %18 = arith.subf %17, %16 : vector<8x128xf32>
    %19 = arith.mulf %15, %18 : vector<8x128xf32>
    %c0_8 = arith.constant 0 : index
    %c0_9 = arith.constant 0 : index
    %20 = vector.load %arg4[%c0_8, %c0_9] : memref<128x128xf32, #tpu.memory_space<vmem>>, vector<128x128xf32>
    %cst_10 = arith.constant dense<0.000000e+00> : vector<8x128xf32>
    %21 = tpu.matmul %19, %20, %cst_10 {dimension_numbers = #tpu.dot_dimension_numbers<[1], [0], [0], [1], [0, 0, 1, 1], [], []>} : vector<8x128xf32>, vector<128x128xf32>, vector<8x128xf32> -> vector<8x128xf32>
    %22 = arith.mulf %10, %21 : vector<8x128xf32>
    %c0_11 = arith.constant 0 : index
    %c0_12 = arith.constant 0 : index
    %23 = vector.load %arg6[%c0_11, %c0_12] : memref<8x128xf32, #tpu.memory_space<vmem>>, vector<8x128xf32>
    tpu.vector_store %arg6[%c0_11, %c0_12], %22 {strides = array<i32>} : memref<8x128xf32, #tpu.memory_space<vmem>>, vector<8x128xf32>,
    return
  }
  func.func @transform_0(%arg0: i32) -> (i32, i32, i32) {
    %c0_i32 = arith.constant 0 : i32
    %c0_i32_0 = arith.constant 0 : i32
    %c0_i32_1 = arith.constant 0 : i32
    %c0_i32_2 = arith.constant 0 : i32
    return %c0_i32, %c0_i32_0, %c0_i32_1 : i32, i32, i32
  }
  func.func @transform_1(%arg0: i32) -> (i32, i32) {
    %c0_i32 = arith.constant 0 : i32
    %c0_i32_0 = arith.constant 0 : i32
    %c0_i32_1 = arith.constant 0 : i32
    return %c0_i32, %c0_i32_0 : i32, i32
  }
  func.func @transform_2(%arg0: i32) -> (i32, i32) {
    %c0_i32 = arith.constant 0 : i32
    %c0_i32_0 = arith.constant 0 : i32
    %c0_i32_1 = arith.constant 0 : i32
    return %c0_i32, %c0_i32_0 : i32, i32
  }
  func.func @transform_3(%arg0: i32) -> (i32, i32) {
    %c0_i32 = arith.constant 0 : i32
    %c0_i32_0 = arith.constant 0 : i32
    %c0_i32_1 = arith.constant 0 : i32
    return %c0_i32, %c0_i32_0 : i32, i32
  }
  func.func @transform_4(%arg0: i32) -> (i32, i32, i32) {
    %c0_i32 = arith.constant 0 : i32
    %c0_i32_0 = arith.constant 0 : i32
    %c0_i32_1 = arith.constant 0 : i32
    return %c0_i32, %arg0, %c0_i32_0 : i32, i32, i32
  }
  func.func @transform_5(%arg0: i32) -> (i32, i32) {
    %c0_i32 = arith.constant 0 : i32
    %c0_i32_0 = arith.constant 0 : i32
    return %arg0, %c0_i32 : i32, i32
  }
}

</mosaic_0001>

<bundles_post_ra>
// kernel: tpu_custom_call.1
= control target key start
LH: loop header
LB: loop body
LE: loop exit
PB: predicated region body
PF: predicated region fallthrough
CT: control target
= control target key end

     0   :  { %10 = vsyncpa [#allocation3], 0  ;;  %s885_s0 = inlined_call_operand.hbm [shape: f32[4,16,128], index: 0, kind: input, shape index: {}]   ;;  %s886_s1 = inlined_call_operand.vmem [shape: f32[1,128], index: 1, kind: input, shape index: {}]   ;;  %s887_s2 = inlined_call_operand.hbm [shape: f32[128,128], index: 2, kind: input, shape index: {}]   ;;  %s888_s3 = inlined_call_operand.hbm [shape: f32[128,128], index: 3, kind: input, shape index: {}]   ;;  %s889_s4 = inlined_call_operand.hbm [shape: f32[4,8,16], index: 4, kind: input, shape index: {}]   ;;  %s890_s5 = inlined_call_operand.hbm [shape: f32[8,128], index: 5, kind: output, shape index: {}]  }
   0x1   :  { %11 = vsyncpa [#allocation6], 0 }
   0x2   :  { %12 = vsyncpa [#allocation9], 0 }
   0x3   :  { %13 = vsyncpa [#allocation4], 0  ;;  %s728_s18 = smov [#allocation5]   ;;  %s729_s20 = smov [#allocation2]  }
   0x4   :  { %s33_s19 = sshll.u32 %s728_s18, 4  ;;  %s19_s21 = sshll.u32 %s729_s20, 4  ;;  %s34_s19 = int_to_ptr.vmem [resolvable:$true] %s33_s19  ;;  %s771_s21 = int_to_ptr.vmem [resolvable:$true] %s19_s21 }
   0x5   :  { %s594_s24 = scalar_lea.hbm %s887_s2, 2048 }
   0x6   :  { %p595_p0 = scmp.ne.s32.totalorder %s887_s2, %s594_s24  ;;  %p598_p1 = scmp.lt.u32.totalorder %s594_s24, %s887_s2 }
   0x8   :  { %p600_p2 = pnand %p598_p1, %p595_p0 }
   0xa   :  { %603 = shalt.err (!%p600_p2)
}
   0xb   :  { %s604_s29 = scalar_lea.vmem %s34_s19, 2048  ;;  %p609_p4 = scmp.lt.s32.totalorder %s34_s19, %s34_s19 }
   0xc   :  { %p605_p3 = scmp.ne.s32.totalorder %s34_s19, %s604_s29  ;;  %p610_p5 = scmp.lt.s32.totalorder %s604_s29, %s604_s29 }
   0xe   :  { %p611_p6 = por %p610_p5, %p609_p4 }
  0x10   :  { %p612_p7 = pnand %p611_p6, %p605_p3 }
  0x12   :  { %615 = shalt.err (!%p612_p7)
}
  0x13   :  { %s730_s30 = smov 128   ;;  %s731_s6 = smov 8  }
  0x14   :  { %39 = dma.hbm_to_vmem [thread:$0]  %s887_s2, 2048, %s34_s19, [#allocation6], %s730_s30, %s730_s30, %s731_s6  }
  0x15   :  { %s616_s11 = scalar_lea.hbm %s885_s0, 1024 }
  0x16   :  { %p617_p8 = scmp.ne.s32.totalorder %s885_s0, %s616_s11  ;;  %p620_p9 = scmp.lt.u32.totalorder %s616_s11, %s885_s0 }
  0x18   :  { %p622_p10 = pnand %p620_p9, %p617_p8 }
  0x1a   :  { %625 = shalt.err (!%p622_p10)
}
  0x1b   :  { %s626_s16 = scalar_lea.vmem %s771_s21, 1024  ;;  %p631_p12 = scmp.lt.s32.totalorder %s771_s21, %s771_s21 }
  0x1c   :  { %p627_p11 = scmp.ne.s32.totalorder %s771_s21, %s626_s16  ;;  %p632_p13 = scmp.lt.s32.totalorder %s626_s16, %s626_s16 }
  0x1e   :  { %p633_p0 = por %p632_p13, %p631_p12 }
  0x20   :  { %p634_p1 = pnand %p633_p0, %p627_p11 }
  0x22   :  { %637 = shalt.err (!%p634_p1)
}
  0x23   :  { %25 = dma.hbm_to_vmem [thread:$0]  %s885_s0, 1024, %s771_s21, [#allocation3], %s730_s30, %s730_s30, %s731_s6  }
  0x24   :  { %s732_s18 = smov [#allocation7]   ;;  %s733_s20 = smov [#allocation8]  }
  0x25   :  { %s45_s19 = sshll.u32 %s732_s18, 4  ;;  %s57_s22 = sshll.u32 %s733_s20, 4  ;;  %s46_s19 = int_to_ptr.vmem [resolvable:$true] %s45_s19  ;;  %s808_s22 = int_to_ptr.vmem [resolvable:$true] %s57_s22 }
  0x26   :  { %s638_s25 = scalar_lea.hbm %s888_s3, 2048 }
  0x27   :  { %p639_p2 = scmp.ne.s32.totalorder %s888_s3, %s638_s25  ;;  %p642_p3 = scmp.lt.u32.totalorder %s638_s25, %s888_s3 }
  0x29   :  { %p644_p4 = pnand %p642_p3, %p639_p2 }
  0x2b   :  { %647 = shalt.err (!%p644_p4)
}
  0x2c   :  { %s648_s0 = scalar_lea.vmem %s46_s19, 2048  ;;  %p653_p6 = scmp.lt.s32.totalorder %s46_s19, %s46_s19 }
  0x2d   :  { %p649_p5 = scmp.ne.s32.totalorder %s46_s19, %s648_s0  ;;  %p654_p7 = scmp.lt.s32.totalorder %s648_s0, %s648_s0 }
  0x2f   :  { %p655_p8 = por %p654_p7, %p653_p6 }
  0x31   :  { %p656_p9 = pnand %p655_p8, %p649_p5 }
  0x33   :  { %659 = shalt.err (!%p656_p9)
}
  0x34   :  { %51 = dma.hbm_to_vmem [thread:$0]  %s888_s3, 2048, %s46_s19, [#allocation6], %s730_s30, %s730_s30, %s731_s6  }
  0x35   :  { %s660_s10 = scalar_lea.hbm %s889_s4, 512 }
  0x36   :  { %p661_p10 = scmp.ne.s32.totalorder %s889_s4, %s660_s10  ;;  %p664_p11 = scmp.lt.u32.totalorder %s660_s10, %s889_s4 }
  0x38   :  { %p666_p12 = pnand %p664_p11, %p661_p10 }
  0x3a   :  { %669 = shalt.err (!%p666_p12)
}
  0x3b   :  { %s670_s15 = scalar_lea.vmem %s808_s22, 512  ;;  %p675_p0 = scmp.lt.s32.totalorder %s808_s22, %s808_s22 }
  0x3c   :  { %p671_p13 = scmp.ne.s32.totalorder %s808_s22, %s670_s15  ;;  %p676_p1 = scmp.lt.s32.totalorder %s670_s15, %s670_s15 }
  0x3e   :  { %p677_p2 = por %p676_p1, %p675_p0 }
  0x40   :  { %p678_p3 = pnand %p677_p2, %p671_p13 }
  0x42   :  { %681 = shalt.err (!%p678_p3)
}
  0x43   :  { %63 = dma.hbm_to_vmem [thread:$0]  %s889_s4, 512, %s808_s22, [#allocation9], %s730_s30, %s730_s30, %s731_s6  }
  0x44   :  { %712 = dma.done.wait [#allocation3], 1024  }
  0x45   :  { %713 = vsyncadd [#allocation3], 4294966272 }
  0x46   :  { %714 = dma.done.wait [#allocation6], 4096  }
  0x47   :  { %715 = vsyncadd [#allocation6], 4294963200 }
  0x48   :  { %716 = dma.done.wait [#allocation9], 512  }
  0x49   :  { %717 = vsyncadd [#allocation9], 4294966784  ;;  %v720_v0 = vmov 0.0   ;;  %s845_s2 = smov 0  }
  0x4a LB: > { %v734_v1 = vmov 0.0|0.0   ;;  %vm735_vm0 = vmmov 0   ;;  %v736_v2 = vmov 0.0   ;;  %s391_s4 = sshll.u32 %s726_s2, 4  ;;  %s390_s30 = sshll.u32 %s726_s2, 3  ;;  %vm90_vm1 = vcmask 130048   ;;  %s726_s2 = sphi %s845_s2, %s81_s2   ;;  %v722_v0 = vphi %v720_v0, %v721_v0  }
  0x4b   : > { %508 = vmatprep.subr.bf16.mxu0 %v734_v1  ;;  %435 = vmatprep.mubr.msk.f32.mxu0 %vm735_vm0, %v736_v2  ;;  %s87_s6 = scalar_lea.vmem [#allocation2], %s391_s4  ;;  %s84_s17 = scalar_lea.vmem [#allocation8], %s390_s30 }
  0x4c   : > { %v88_v3 = vld [vmem:[%s87_s6] sm:$0xff]  ;;  %v89_v4 = vld [vmem:[%s87_s6 + $0x8] sm:$0xff]  ;;  %s81_s2 = sadd.s32 1, %s726_s2  }
  0x4d   : > { %v509_v5 = vpack.c.bf16 %v89_v4, %v88_v3  ;;  %v85_v6 = vld [vmem:[%s84_s17] sm:$0xff]  ;;  %p78_p4 = scmp.ge.s32.totalorder %s81_s2, 4  }
  0x4e   :  { %v393_v14 = vld [vmem:[%s886_s1] ss:$0 sm:$0xff] (%p78_p4)  ;;  %v183_v16 = vld [vmem:[#allocation5 + $0x8] sm:$0xff] (%p78_p4)  ;;  %v737_v18 = vmov (%p78_p4), 0.0|0.0   ;;  %v184_v20 = vld [vmem:[#allocation5 + $0x10] sm:$0xff] (%p78_p4)  ;;  %vm738_vm2 = vmmov (%p78_p4), 0  }
  0x4f   : > { %510 = vmatpush3.bf16.msra.mxu0 %v509_v5  ;;  %v182_v15 = vld [vmem:[#allocation5] sm:$0xff] (%p78_p4)  ;;  %v185_v21 = vld [vmem:[#allocation5 + $0x18] sm:$0xff] (%p78_p4)  ;;  %535 = vmatprep.subr.bf16.mxu1 (%p78_p4), %v737_v18  ;;  %v187_v24 = vld [vmem:[#allocation5 + $0x28] sm:$0xff] (%p78_p4)  ;;  %v739_v37 = vmov (%p78_p4), 0.0   ;;  %s740_s1 = smov (%p78_p4), [#allocation10]  }
  0x50   :  { %511 = vmatprep.subr.bf16.mxu0 (%p78_p4), %v737_v18  ;;  %v512_v19 = vpack.c.bf16 (%p78_p4), %v183_v16, %v182_v15  ;;  %v515_v22 = vpack.c.bf16 (%p78_p4), %v185_v21, %v184_v20  ;;  %v186_v23 = vld [vmem:[#allocation5 + $0x20] sm:$0xff] (%p78_p4)  ;;  %v188_v26 = vld [vmem:[#allocation5 + $0x30] sm:$0xff] (%p78_p4)  ;;  %v189_v27 = vld [vmem:[#allocation5 + $0x38] sm:$0xff] (%p78_p4)  ;;  %505 = vmatprep.mubr.msk.f32.mxu1 (%p78_p4), %vm738_vm2, %v739_v37  ;;  %s367_s20 = sshll.u32 (%p78_p4), %s740_s1, 4  ;;  %s368_s20 = int_to_ptr.vmem [resolvable:$true] %s367_s20 }
  0x51   :  { %v518_v25 = vpack.c.bf16 (%p78_p4), %v187_v24, %v186_v23  ;;  %v521_v28 = vpack.c.bf16 (%p78_p4), %v189_v27, %v188_v26  ;;  %v190_v29 = vld [vmem:[#allocation5 + $0x40] sm:$0xff] (%p78_p4)  ;;  %v191_v30 = vld [vmem:[#allocation5 + $0x48] sm:$0xff] (%p78_p4)  ;;  %v192_v32 = vld [vmem:[#allocation5 + $0x50] sm:$0xff] (%p78_p4)  ;;  %s682_s22 = scalar_lea.vmem (%p78_p4), %s368_s20, 128  ;;  %p687_p6 = scmp.lt.s32.totalorder (%p78_p4), %s368_s20, %s368_s20 }
  0x52   : > { %436 = vmatmul.mubr.msk.f32.vlgmr.msra.gmra.mrb[0].mxu0 %vm90_vm1, %v85_v6  ;;  %v524_v31 = vpack.c.bf16 (%p78_p4), %v191_v30, %v190_v29  ;;  %v193_v33 = vld [vmem:[#allocation5 + $0x58] sm:$0xff] (%p78_p4)  ;;  %v194_v35 = vld [vmem:[#allocation5 + $0x60] sm:$0xff] (%p78_p4)  ;;  %v195_v36 = vld [vmem:[#allocation5 + $0x68] sm:$0xff] (%p78_p4)  ;;  %p683_p5 = scmp.ne.s32.totalorder (%p78_p4), %s368_s20, %s682_s22  ;;  %p688_p7 = scmp.lt.s32.totalorder (%p78_p4), %s682_s22, %s682_s22 }
  0x53   :  { %513 = vmatpush3.bf16.msra.mxu0 (%p78_p4), %v512_v19  ;;  %v527_v34 = vpack.c.bf16 (%p78_p4), %v193_v33, %v192_v32  ;;  %470 = vmatprep.mubr.msk.f32.mxu0 (%p78_p4), %vm738_vm2, %v739_v37  ;;  %v530_v38 = vpack.c.bf16 (%p78_p4), %v195_v36, %v194_v35  ;;  %v196_v39 = vld [vmem:[#allocation5 + $0x70] sm:$0xff] (%p78_p4)  ;;  %v197_v40 = vld [vmem:[#allocation5 + $0x78] sm:$0xff] (%p78_p4)  ;;  %v273_v42 = vld [vmem:[#allocation7] sm:$0xff] (%p78_p4) }
  0x54   :  { %514 = vmatprep.subr.bf16.mxu0 (%p78_p4), %v737_v18  ;;  %v533_v41 = vpack.c.bf16 (%p78_p4), %v197_v40, %v196_v39  ;;  %v274_v43 = vld [vmem:[#allocation7 + $0x8] sm:$0xff] (%p78_p4)  ;;  %v275_v44 = vld [vmem:[#allocation7 + $0x10] sm:$0xff] (%p78_p4)  ;;  %v276_v46 = vld [vmem:[#allocation7 + $0x18] sm:$0xff] (%p78_p4)  ;;  %p689_p8 = por (%p78_p4), %p688_p7, %p687_p6 }
  0x55   :  { %v536_v45 = vpack.c.bf16 (%p78_p4), %v274_v43, %v273_v42  ;;  %v539_v47 = vpack.c.bf16 (%p78_p4), %v276_v46, %v275_v44  ;;  %v277_v48 = vld [vmem:[#allocation7 + $0x20] sm:$0xff] (%p78_p4)  ;;  %v278_v49 = vld [vmem:[#allocation7 + $0x28] sm:$0xff] (%p78_p4)  ;;  %v279_v55 = vld [vmem:[#allocation7 + $0x30] sm:$0xff] (%p78_p4) }
  0x56   :  { %v542_v50 = vpack.c.bf16 (%p78_p4), %v278_v49, %v277_v48  ;;  %v280_v56 = vld [vmem:[#allocation7 + $0x38] sm:$0xff] (%p78_p4)  ;;  %v281_v58 = vld [vmem:[#allocation7 + $0x40] sm:$0xff] (%p78_p4)  ;;  %v282_v59 = vld [vmem:[#allocation7 + $0x48] sm:$0xff] (%p78_p4)  ;;  %p690_p9 = pnand (%p78_p4), %p689_p8, %p683_p5 }
  0x57   :  { %516 = vmatpush3.bf16.msra.mxu0 (%p78_p4), %v515_v22  ;;  %537 = vmatpush3.bf16.msra.mxu1 (%p78_p4), %v536_v45  ;;  %v545_v57 = vpack.c.bf16 (%p78_p4), %v280_v56, %v279_v55  ;;  %v548_v60 = vpack.c.bf16 (%p78_p4), %v282_v59, %v281_v58  ;;  %v283_v61 = vld [vmem:[#allocation7 + $0x50] sm:$0xff] (%p78_p4)  ;;  %v284_v62 = vld [vmem:[#allocation7 + $0x58] sm:$0xff] (%p78_p4)  ;;  %v286_v1 = vld [vmem:[#allocation7 + $0x68] sm:$0xff] (%p78_p4) }
  0x58   :  { %517 = vmatprep.subr.bf16.mxu0 (%p78_p4), %v737_v18  ;;  %538 = vmatprep.subr.bf16.mxu1 (%p78_p4), %v737_v18  ;;  %v551_v63 = vpack.c.bf16 (%p78_p4), %v284_v62, %v283_v61  ;;  %v287_v3 = vld [vmem:[#allocation7 + $0x70] sm:$0xff] (%p78_p4)  ;;  %v288_v4 = vld [vmem:[#allocation7 + $0x78] sm:$0xff] (%p78_p4) }
  0x59   :  { %v557_v5 = vpack.c.bf16 (%p78_p4), %v288_v4, %v287_v3 }
  0x5b   :  { %519 = vmatpush3.bf16.msra.mxu0 (%p78_p4), %v518_v25  ;;  %540 = vmatpush3.bf16.msra.mxu1 (%p78_p4), %v539_v47 }
  0x5c   :  { %520 = vmatprep.subr.bf16.mxu0 (%p78_p4), %v737_v18  ;;  %541 = vmatprep.subr.bf16.mxu1 (%p78_p4), %v737_v18 }
  0x5f   :  { %522 = vmatpush3.bf16.msra.mxu0 (%p78_p4), %v521_v28  ;;  %543 = vmatpush3.bf16.msra.mxu1 (%p78_p4), %v542_v50 }
  0x60   :  { %523 = vmatprep.subr.bf16.mxu0 (%p78_p4), %v737_v18  ;;  %544 = vmatprep.subr.bf16.mxu1 (%p78_p4), %v737_v18 }
  0x63   :  { %525 = vmatpush3.bf16.msra.mxu0 (%p78_p4), %v524_v31  ;;  %546 = vmatpush3.bf16.msra.mxu1 (%p78_p4), %v545_v57 }
  0x64   :  { %526 = vmatprep.subr.bf16.mxu0 (%p78_p4), %v737_v18  ;;  %547 = vmatprep.subr.bf16.mxu1 (%p78_p4), %v737_v18 }
  0x67   :  { %528 = vmatpush3.bf16.msra.mxu0 (%p78_p4), %v527_v34  ;;  %549 = vmatpush3.bf16.msra.mxu1 (%p78_p4), %v548_v60 }
  0x68   :  { %529 = vmatprep.subr.bf16.mxu0 (%p78_p4), %v737_v18  ;;  %550 = vmatprep.subr.bf16.mxu1 (%p78_p4), %v737_v18 }
  0x6b   :  { %531 = vmatpush3.bf16.msra.mxu0 (%p78_p4), %v530_v38  ;;  %552 = vmatpush3.bf16.msra.mxu1 (%p78_p4), %v551_v63 }
  0x6c   :  { %532 = vmatprep.subr.bf16.mxu0 (%p78_p4), %v737_v18  ;;  %553 = vmatprep.subr.bf16.mxu1 (%p78_p4), %v737_v18 }
  0x6f   :  { %534 = vmatpush3.bf16.msra.mxu0 (%p78_p4), %v533_v41 }
 0x125   : > { %v160_v7 = vpop.f32.mrb[0].mxu0 }
 0x126   : > { %v164_v8 = vmax.f32 %v160_v7, 1e-15  ;;  %v437_v9 = vpop.f32.mrb[1].mxu0 }
 0x128   : > { %v165_v10 = vmin.f32 %v164_v8, 1e+15 }
 0x12a   : > { %588 = vlog2.f32 %v165_v10 }
 0x133   :  { %80 = sbr.rel (!%p78_p4) target bundleno = 74 (0x4a), region = 65 }
 0x134   : > { %v589_v11 = vpop.eup %588 }
 0x135   : > { %v167_v12 = vmul.f32 0.6931472, %v589_v11 }
 0x137   : > { %v168_v13 = vadd.f32 %v722_v0, %v167_v12  }
 0x139   : > { %v721_v0 = vmov %v168_v13   ;;  %v853_v17 = vadd.f32 (%p78_p4), %v393_v14, %v168_v13 }
 0x13a   :  { %v285_v0 = vld [vmem:[#allocation7 + $0x60] sm:$0xff] }
 0x13b   :  { %177 = vmax.xlane.f32.xlu0 %v853_v17  ;;  %v554_v2 = vpack.c.bf16 %v286_v1, %v285_v0 }
 0x13d   :  { %555 = vmatpush3.bf16.msra.mxu1 %v554_v2 }
 0x13e   :  { %556 = vmatprep.subr.bf16.mxu1 %v737_v18 }
 0x141   :  { %558 = vmatpush3.bf16.msra.mxu1 %v557_v5 }
 0x1c8   :  { %v178_v51 = vpop.xlane.xlu0 %177 }
 0x1c9   :  { %v179_v52 = vsub.f32 %v853_v17, %v178_v51 }
 0x1cb   :  { %v180_v53 = vmul.f32 1.442695, %v179_v52 }
 0x1cd   :  { %590 = vpow2.f32 %v180_v53 }
 0x1d7   :  { %v591_v54 = vpop.eup %590 }
 0x1d8   :  { %471 = vmatmul.mubr.f32.vlgmr.msra.gmra.mrb[0].mxu0 %v591_v54 }
 0x2ab   :  { %v264_v6 = vpop.f32.mrb[0].mxu0 }
 0x2ac   :  { %v268_v7 = vmax.f32 %v264_v6, 1e-30  ;;  %v472_v8 = vpop.f32.mrb[1].mxu0 }
 0x2ae   :  { %592 = vrcp.f32 %v268_v7 }
 0x2b8   :  { %v593_v9 = vpop.eup %592 }
 0x2b9   :  { %v270_v10 = vmul.f32 %v593_v9, %v268_v7 }
 0x2bb   :  { %v271_v11 = vsub.f32 2.0, %v270_v10 }
 0x2bd   :  { %v272_v12 = vmul.f32 %v593_v9, %v271_v11 }
 0x2bf   :  { %506 = vmatmul.mubr.f32.vlgmr.msra.gmra.mrb[0].mxu1 %v272_v12 }
 0x392   :  { %v355_v13 = vpop.f32.mrb[0].mxu1 }
 0x393   :  { %v359_v14 = vmul.f32 %v591_v54, %v355_v13  ;;  %v507_v15 = vpop.f32.mrb[1].mxu1 }
 0x395   :  { %360 = vst [vmem:[#allocation10] sm:$0xff] %v359_v14 }
 0x396   :  { %693 = shalt.err (!%p690_p9)
}
 0x397   :  { %s694_s25 = scalar_lea.hbm %s890_s5, 128 }
 0x398   :  { %p695_p10 = scmp.ne.s32.totalorder %s890_s5, %s694_s25  ;;  %p698_p11 = scmp.lt.u32.totalorder %s694_s25, %s890_s5 }
 0x39a   :  { %p700_p12 = pnand %p698_p11, %p695_p10 }
 0x39c   :  { %703 = shalt.err (!%p700_p12)
}
 0x39d   :  { %370 = dma.vmem_to_hbm [thread:$0]  %s368_s20, 128, %s890_s5, [#allocation4]  }
 0x39e   :  { %718 = dma.done.wait [#allocation4], 128  }
 0x39f   :  { %719 = vsyncadd [#allocation4], 4294967168 }
 0x3a0   :  { %374 = vsyncpa [#allocation3], 1 }
 0x3a1   :  { %375 = vsyncpa [#allocation6], 1 }
 0x3a2   :  { %376 = vsyncpa [#allocation9], 1 }
 0x3a3   :  { %377 = vsyncpa [#allocation4], 1 }

</bundles_post_ra>
